<compile_context>
chip_gen: v5e
topology: v5e:2x2
jax: 0.10.0
libtpu: 0.0.40
codegen_flags: <defaults>
</compile_context>

<pallas_src>
import jax
import jax.numpy as jnp
from jax.experimental import pallas as pl
from jax.experimental.pallas import tpu as pltpu


def _round_up(x, m):
    return ((x + m - 1) // m) * m


def _fused_embed_project_kernel(ids_ref, fused_ref, out_ref):
    # ids_ref  : (TM, 1)     int32  token ids for this row tile
    # fused_ref: (V, S_pad)  f32    emb_table @ mat.T, zero-padded to a
    #                               lane-dense width; grid-invariant (resident)
    # out_ref  : (TM, S_pad) f32
    ids = ids_ref[...]                                               # (TM, 1)
    tm = ids.shape[0]
    vocab = fused_ref.shape[0]
    vocab_iota = jax.lax.broadcasted_iota(jnp.int32, (tm, vocab), 1)
    onehot = (ids == vocab_iota).astype(fused_ref.dtype)             # (TM, V)
    # Single MXU matmul: gather + projection fused.  S_pad is a multiple of
    # 128 -> unmasked full-width output stores.
    out = jnp.dot(onehot, fused_ref[...],
                  preferred_element_type=jnp.float32)                # (TM, S_pad)
    out_ref[...] = out.astype(out_ref.dtype)


def _embed_project_kernel(ids_ref, table_ref, mat_t_ref, out_ref):
    # Unfused path (size > input_size, or V too large to re-fuse every call).
    # ids_ref  : (TM, 1)     int32
    # table_ref: (V, D)      f32   full embedding table (grid-invariant)
    # mat_t_ref: (D, S_pad)  f32   projection matrix pre-transposed in the
    #                              wrapper and zero-padded to lane-dense width
    # out_ref  : (TM, S_pad) f32
    ids = ids_ref[...]
    tm = ids.shape[0]
    vocab = table_ref.shape[0]
    vocab_iota = jax.lax.broadcasted_iota(jnp.int32, (tm, vocab), 1)
    onehot = (ids == vocab_iota).astype(table_ref.dtype)             # (TM, V)
    embed = jnp.dot(onehot, table_ref[...],
                    preferred_element_type=jnp.float32)              # (TM, D)
    out = jnp.dot(embed, mat_t_ref[...],
                  preferred_element_type=jnp.float32)                # (TM, S_pad)
    out_ref[...] = out.astype(out_ref.dtype)


def embed_and_project(x, emb_table, mat, *, tm=1024):
    """x: (B, L) int; emb_table: (V, D) f32; mat: (S, D) f32 -> (B, L, S) f32."""
    B, L = x.shape
    N = B * L
    V, D = emb_table.shape
    S, D2 = mat.shape
    assert D2 == D, "input_size must match embedding dim"
    assert V >= 1, "padding rows use token id 0, so the vocab must be non-empty"

    # Lane-dense projection width.
    S_pad = _round_up(S, 128)

    # Generation-aware VMEM ceiling (v7x: 64 MiB per TensorCore; v5e/v6e: 128).
    try:
        vmem_cap = int(pltpu.get_tpu_info().vmem_capacity_bytes)
    except Exception:
        vmem_cap = 64 * (1 << 20)            # assume the smallest (v7x per-TC)
    vmem_ceiling = max(16 * (1 << 20), vmem_cap - 8 * (1 << 20))

    # Fuse only when the once-per-call V*D*S precompute is comparable to the
    # N*D*S per-token projection work AND the fused table fits comfortably in
    # per-core VMEM (v7x keeps a copy per TensorCore).
    fused_table_bytes = V * S_pad * 4
    fuse = (S <= D) and (V <= 4 * N) and (fused_table_bytes <= vmem_ceiling // 4)

    if fuse:
        resident_bytes = fused_table_bytes
        inter_per_row = 4 * V                       # onehot staging
    else:
        resident_bytes = V * D * 4 + D * S_pad * 4
        inter_per_row = 4 * V + 4 * D               # onehot + embed staging

    # Adaptive row tile: multiple of 8 (sublanes), no larger than needed, and
    # halved until the VMEM budget fits under the per-core ceiling.
    tm = max(8, min(tm, _round_up(N, 8)))
    tm = (tm // 8) * 8

    def _vmem_need(tm_, resident_buffers):
        tile_bytes = tm_ * 4 + tm_ * S_pad * 4      # ids tile + out tile
        return (resident_buffers * resident_bytes
                + 2 * tile_bytes                    # double-buffered by pipeline
                + tm_ * inter_per_row               # in-kernel intermediates
                + 2 * (1 << 20))                    # slack

    while tm > 8 and _vmem_need(tm, 2) > vmem_ceiling:
        tm = max(8, ((tm // 2) // 8) * 8)

    n_pad = _round_up(N, tm)
    ids = x.reshape(N, 1).astype(jnp.int32)
    if n_pad != N:
        # Pad with token id 0 (valid for any non-empty vocab); padded rows are
        # sliced off below.
        ids = jnp.pad(ids, ((0, n_pad - N), (0, 0)))

    if fuse:
        # One-time (V x D x S) precompute amortized over all N tokens; default
        # precision (review: no Precision.HIGHEST on a per-call op).
        fused = jax.lax.dot_general(
            emb_table, mat,
            dimension_numbers=(((1,), (1,)), ((), ())),
            preferred_element_type=jnp.float32)                     # (V, S)
        fused = jnp.pad(fused, ((0, 0), (0, S_pad - S)))            # (V, S_pad)
        operands = (ids, fused)
        resident_shapes = [(V, S_pad)]
        kernel = _fused_embed_project_kernel
    else:
        # Pre-transpose mat once in the wrapper: kernel consumes (D, S_pad)
        # directly with a plain jnp.dot.
        mat_t = jnp.pad(mat.T, ((0, 0), (0, S_pad - S)))            # (D, S_pad)
        operands = (ids, emb_table, mat_t)
        resident_shapes = [(V, D), (D, S_pad)]
        kernel = _embed_project_kernel

    def _run(single_buffer_resident):
        resident_buffers = 1 if single_buffer_resident else 2
        res_kwargs = ({"pipeline_mode": pl.Buffered(1)}
                      if single_buffer_resident else {})
        in_specs = [pl.BlockSpec((tm, 1), lambda i: (i, 0))]         # ids tile
        for shape in resident_shapes:                                # resident
            in_specs.append(pl.BlockSpec(shape, lambda i: (0, 0), **res_kwargs))
        vmem_limit = int(min(vmem_ceiling,
                             max(8 * (1 << 20),
                                 _vmem_need(tm, resident_buffers))))
        out_flat = pl.pallas_call(
            kernel,
            out_shape=jax.ShapeDtypeStruct((n_pad, S_pad), jnp.float32),
            grid_spec=pltpu.PrefetchScalarGridSpec(
                num_scalar_prefetch=0,
                grid=(n_pad // tm,),
                in_specs=in_specs,
                out_specs=pl.BlockSpec((tm, S_pad), lambda i: (i, 0)),
            ),
            compiler_params=pltpu.CompilerParams(
                dimension_semantics=("parallel",),
                vmem_limit_bytes=vmem_limit),
        )(*operands)
        return jax.block_until_ready(out_flat)

    try:
        # Grid-invariant operands single-buffered: fetched once, so default
        # double-buffering only wastes resident VMEM (matters on v7x).
        out_flat = _run(True)
    except Exception:
        # Fallback for JAX versions that reject pipeline_mode / Buffered(1)
        # on pallas_call BlockSpecs; semantics are identical.
        out_flat = _run(False)

    return out_flat[:N, :S].reshape(B, L, S)


if __name__ == "__main__":
    key = jax.random.PRNGKey(0)
    k_emb, k_mat, k_x, k_emb2, k_mat2, k_x2 = jax.random.split(key, 6)

    # Config 1 (module's toy setup): vocab=32, input_size=32, size=16,
    # batch=2, length=8.  Exercises the fused (S <= D, small V) kernel and the
    # lane-dense S -> 128 output padding.
    vocab, input_size, size = 32, 32, 16
    batch, length = 2, 8
    emb_table = jax.random.normal(k_emb, (vocab, input_size), dtype=jnp.float32)
    mat = jax.random.normal(k_mat, (size, input_size), dtype=jnp.float32)
    x = jax.random.randint(k_x, (batch, length), 0, vocab, dtype=jnp.int32)

    out = jax.block_until_ready(embed_and_project(x, emb_table, mat))
    ref = jnp.matmul(emb_table[x], mat.T)
    assert out.shape == (batch, length, size)
    assert jnp.allclose(out, ref, atol=1e-3, rtol=1e-3), float(
        jnp.max(jnp.abs(out - ref)))

    # Config 2: size > input_size and N not a multiple of 8 -> exercises the
    # unfused kernel (pre-transposed mat) and the row-padding path.
    vocab2, input_size2, size2 = 64, 16, 32
    batch2, length2 = 3, 5
    emb_table2 = jax.random.normal(k_emb2, (vocab2, input_size2), dtype=jnp.float32)
    mat2 = jax.random.normal(k_mat2, (size2, input_size2), dtype=jnp.float32)
    x2 = jax.random.randint(k_x2, (batch2, length2), 0, vocab2, dtype=jnp.int32)

    out2 = jax.block_until_ready(embed_and_project(x2, emb_table2, mat2))
    ref2 = jnp.matmul(emb_table2[x2], mat2.T)
    assert out2.shape == (batch2, length2, size2)
    assert jnp.allclose(out2, ref2, atol=1e-3, rtol=1e-3), float(
        jnp.max(jnp.abs(out2 - ref2)))

    print("KERNEL_OK")
</pallas_src>

<mosaic_0001>
module attributes {stable_mosaic.version = 11 : i64} {
  func.func @_fused_embed_project_kernel(%arg0: i32, %arg1: memref<16x1xi32, #tpu.memory_space<vmem>>, %arg2: memref<32x128xf32, #tpu.memory_space<vmem>>, %arg3: memref<16x128xf32, #tpu.memory_space<vmem>>) attributes {dimension_semantics = [#tpu.dimension_semantics<parallel>], iteration_bounds = array<i64: 1>, scalar_prefetch = 0 : i64, scratch_operands = 0 : i64, tpu.core_type = #tpu.core_type<tc>, window_params = [{transform_indices = @transform_0, window_bounds = array<i64: 16, 1>}, {pipeline_mode = #tpu.pipeline_mode<synchronous>, transform_indices = @transform_1, window_bounds = array<i64: 32, 128>}, {transform_indices = @transform_2, window_bounds = array<i64: 16, 128>}]} {
    %c0 = arith.constant 0 : index
    %c0_0 = arith.constant 0 : index
    %0 = vector.load %arg1[%c0, %c0_0] : memref<16x1xi32, #tpu.memory_space<vmem>>, vector<16x1xi32>
    %1 = tpu.iota {dimensions = array<i32: 1>} : vector<16x32xi32>
    %2 = vector.broadcast %0 : vector<16x1xi32> to vector<16x32xi32>
    %3 = arith.cmpi eq, %2, %1 : vector<16x32xi32>
    %4 = arith.extui %3 : vector<16x32xi1> to vector<16x32xi32>
    %5 = arith.sitofp %4 : vector<16x32xi32> to vector<16x32xf32>
    %c0_1 = arith.constant 0 : index
    %c0_2 = arith.constant 0 : index
    %6 = vector.load %arg2[%c0_1, %c0_2] : memref<32x128xf32, #tpu.memory_space<vmem>>, vector<32x128xf32>
    %cst = arith.constant dense<0.000000e+00> : vector<16x128xf32>
    %7 = tpu.matmul %5, %6, %cst {dimension_numbers = #tpu.dot_dimension_numbers<[1], [0], [0], [1], [0, 0, 1, 1], [], []>} : vector<16x32xf32>, vector<32x128xf32>, vector<16x128xf32> -> vector<16x128xf32>
    %c0_3 = arith.constant 0 : index
    %c0_4 = arith.constant 0 : index
    %8 = vector.load %arg3[%c0_3, %c0_4] : memref<16x128xf32, #tpu.memory_space<vmem>>, vector<16x128xf32>
    tpu.vector_store %arg3[%c0_3, %c0_4], %7 {strides = array<i32>} : memref<16x128xf32, #tpu.memory_space<vmem>>, vector<16x128xf32>,
    return
  }
  func.func @transform_0(%arg0: i32) -> (i32, i32) {
    %c0_i32 = arith.constant 0 : i32
    %c0_i32_0 = arith.constant 0 : i32
    return %arg0, %c0_i32 : i32, i32
  }
  func.func @transform_1(%arg0: i32) -> (i32, i32) {
    %c0_i32 = arith.constant 0 : i32
    %c0_i32_0 = arith.constant 0 : i32
    %c0_i32_1 = arith.constant 0 : i32
    return %c0_i32, %c0_i32_0 : i32, i32
  }
  func.func @transform_2(%arg0: i32) -> (i32, i32) {
    %c0_i32 = arith.constant 0 : i32
    %c0_i32_0 = arith.constant 0 : i32
    return %arg0, %c0_i32 : i32, i32
  }
}

module attributes {stable_mosaic.version = 11 : i64} {
  func.func @_fused_embed_project_kernel(%arg0: i32, %arg1: memref<16x1xi32, #tpu.memory_space<vmem>>, %arg2: memref<32x128xf32, #tpu.memory_space<vmem>>, %arg3: memref<16x128xf32, #tpu.memory_space<vmem>>) attributes {dimension_semantics = [#tpu.dimension_semantics<parallel>], iteration_bounds = array<i64: 1>, scalar_prefetch = 0 : i64, scratch_operands = 0 : i64, tpu.core_type = #tpu.core_type<tc>, window_params = [{transform_indices = @transform_0, window_bounds = array<i64: 16, 1>}, {pipeline_mode = #tpu.pipeline_mode<synchronous>, transform_indices = @transform_1, window_bounds = array<i64: 32, 128>}, {transform_indices = @transform_2, window_bounds = array<i64: 16, 128>}]} {
    %c0 = arith.constant 0 : index
    %c0_0 = arith.constant 0 : index
    %0 = vector.load %arg1[%c0, %c0_0] : memref<16x1xi32, #tpu.memory_space<vmem>>, vector<16x1xi32>
    %1 = tpu.iota {dimensions = array<i32: 1>} : vector<16x32xi32>
    %2 = vector.broadcast %0 : vector<16x1xi32> to vector<16x32xi32>
    %3 = arith.cmpi eq, %2, %1 : vector<16x32xi32>
    %4 = arith.extui %3 : vector<16x32xi1> to vector<16x32xi32>
    %5 = arith.sitofp %4 : vector<16x32xi32> to vector<16x32xf32>
    %c0_1 = arith.constant 0 : index
    %c0_2 = arith.constant 0 : index
    %6 = vector.load %arg2[%c0_1, %c0_2] : memref<32x128xf32, #tpu.memory_space<vmem>>, vector<32x128xf32>
    %cst = arith.constant dense<0.000000e+00> : vector<16x128xf32>
    %7 = tpu.matmul %5, %6, %cst {dimension_numbers = #tpu.dot_dimension_numbers<[1], [0], [0], [1], [0, 0, 1, 1], [], []>} : vector<16x32xf32>, vector<32x128xf32>, vector<16x128xf32> -> vector<16x128xf32>
    %c0_3 = arith.constant 0 : index
    %c0_4 = arith.constant 0 : index
    %8 = vector.load %arg3[%c0_3, %c0_4] : memref<16x128xf32, #tpu.memory_space<vmem>>, vector<16x128xf32>
    tpu.vector_store %arg3[%c0_3, %c0_4], %7 {strides = array<i32>} : memref<16x128xf32, #tpu.memory_space<vmem>>, vector<16x128xf32>,
    return
  }
  func.func @transform_0(%arg0: i32) -> (i32, i32) {
    %c0_i32 = arith.constant 0 : i32
    %c0_i32_0 = arith.constant 0 : i32
    return %arg0, %c0_i32 : i32, i32
  }
  func.func @transform_1(%arg0: i32) -> (i32, i32) {
    %c0_i32 = arith.constant 0 : i32
    %c0_i32_0 = arith.constant 0 : i32
    %c0_i32_1 = arith.constant 0 : i32
    return %c0_i32, %c0_i32_0 : i32, i32
  }
  func.func @transform_2(%arg0: i32) -> (i32, i32) {
    %c0_i32 = arith.constant 0 : i32
    %c0_i32_0 = arith.constant 0 : i32
    return %arg0, %c0_i32 : i32, i32
  }
}

</mosaic_0001>

<bundles_post_ra>
// kernel: tpu_custom_call.1
= control target key start
LH: loop header
LB: loop body
LE: loop exit
PB: predicated region body
PF: predicated region fallthrough
CT: control target
= control target key end

     0   :  { %7 = vsyncpa [#allocation3], 0  ;;  %s205_s0 = inlined_call_operand.vmem [shape: s32[16,1], index: 0, kind: input, shape index: {}]   ;;  %s206_s1 = inlined_call_operand.hbm [shape: f32[32,128], index: 1, kind: input, shape index: {}]   ;;  %s207_s2 = inlined_call_operand.hbm [shape: f32[16,128], index: 2, kind: output, shape index: {}]  }
   0x1   :  { %8 = vsyncpa [#allocation4], 0  ;;  %s15_s11 = sshll.u32 %s206_s1, 4  ;;  %s166_s12 = smov [#allocation2]   ;;  %s16_s11 = int_to_ptr.hbm [resolvable:$true] %s15_s11 }
   0x2   :  { %s17_s13 = sshll.u32 %s166_s12, 4  ;;  %s167_s14 = smov 128   ;;  %s18_s13 = int_to_ptr.vmem [resolvable:$true] %s17_s13 }
   0x3   :  { %s168_s15 = smov 8  }
   0x4   :  { %23 = dma.hbm_to_vmem [thread:$0]  %s16_s11, 512, %s18_s13, [#allocation3], %s167_s14, %s167_s14, %s168_s15  }
   0x5   :  { %162 = dma.done.wait [#allocation3], 512  }
   0x6   :  { %163 = vsyncadd [#allocation3], 4294966784  ;;  %v169_v0 = vmov 0   ;;  %v28_v1 = vld [vmem:[%s205_s0] sm:$0xff]  ;;  %v47_v2 = vld [vmem:[#allocation2 + $0x18] sm:$0xff]  ;;  %v30_v7 = vlaneseq  ;;  %vm48_vm0 = vcmask 261120  }
   0x7   :  { %113 = vset.pattern.permute.xlu0 %v169_v0  ;;  %67 = vmatpush.msra.mxu0 %v47_v2  ;;  %v46_v3 = vld [vmem:[#allocation2 + $0x10] sm:$0xff]  ;;  %v45_v4 = vld [vmem:[#allocation2 + $0x8] sm:$0xff]  ;;  %v44_v6 = vld [vmem:[#allocation2] sm:$0xff]  ;;  %v170_v10 = vmov 0.0   ;;  %s86_s22 = sshll.u32 %s207_s2, 4  ;;  %s87_s22 = int_to_ptr.hbm [resolvable:$true] %s86_s22 }
   0x8   :  { %33 = vperm.xlu0 %113, %v28_v1   ;;  %103 = vmatpush.msra.mxu1 %v47_v2  ;;  %v29_v5 = vld [vmem:[%s205_s0 + $0x8] sm:$0xff]  ;;  %v31_v8 = vand.u32 127, %v30_v7  ;;  %s171_s0 = smov [#allocation5]  }
   0x9   :  { %68 = vmatpush.msra.mxu0 %v46_v3  ;;  %s84_s19 = sshll.u32 %s171_s0, 4  ;;  %s85_s19 = int_to_ptr.vmem [resolvable:$true] %s84_s19 }
   0xa   :  { %104 = vmatpush.msra.mxu1 %v46_v3 }
   0xb   :  { %69 = vmatpush.msra.mxu0 %v45_v4 }
   0xc   :  { %105 = vmatpush.msra.mxu1 %v45_v4 }
   0xd   :  { %70 = vmatpush.msra.mxu0 %v44_v6 }
   0xe   :  { %106 = vmatpush.msra.mxu1 %v44_v6 }
  0x10   :  { %36 = vperm.xlu0 %113, %v29_v5  }
  0x7a   :  { %v34_v9 = vpop.permute.xlu0 %33 }
  0x7b   :  { %vm38_vm1 = vcmp.eq.s32.totalorder %v34_v9, %v31_v8 }
  0x7c   :  { %v99_v11 = vsel %vm38_vm1, 1.0, %v170_v10 }
  0x7d   :  { %101 = vmatmul.msk.f32.vlgmr.msra.gmra.mxu0 %vm48_vm0, %v99_v11 }
  0x82   :  { %v37_v12 = vpop.permute.xlu0 %36 }
  0x83   :  { %vm39_vm2 = vcmp.eq.s32.totalorder %v37_v12, %v31_v8 }
  0x84   :  { %v100_v13 = vsel %vm39_vm2, 1.0, %v170_v10 }
  0x85   :  { %102 = vmatmul.msk.f32.vlgmr.msra.gmra.mxu1 %vm48_vm0, %v100_v13 }
  0xfa   :  { %v72_v14 = vpop.f32.mrf.mxu0 }
  0xfb   :  { %78 = vst [vmem:[#allocation5] sm:$0xff] %v72_v14 }
 0x102   :  { %v75_v15 = vpop.f32.mrf.mxu1 }
 0x103   :  { %79 = vst [vmem:[#allocation5 + $0x8] sm:$0xff] %v75_v15 }
 0x104   :  { %92 = dma.vmem_to_hbm [thread:$0]  %s85_s19, 256, %s87_s22, [#allocation4], %s167_s14, %s167_s14, %s168_s15  }
 0x105   :  { %164 = dma.done.wait [#allocation4], 256  }
 0x106   :  { %165 = vsyncadd [#allocation4], 4294967040 }
 0x107   :  { %97 = vsyncpa [#allocation3], 1 }
 0x108   :  { %98 = vsyncpa [#allocation4], 1 }

// kernel: tpu_custom_call.1
= control target key start
LH: loop header
LB: loop body
LE: loop exit
PB: predicated region body
PF: predicated region fallthrough
CT: control target
= control target key end

     0   :  { %7 = vsyncpa [#allocation3], 0  ;;  %s205_s0 = inlined_call_operand.vmem [shape: s32[16,1], index: 0, kind: input, shape index: {}]   ;;  %s206_s1 = inlined_call_operand.hbm [shape: f32[32,128], index: 1, kind: input, shape index: {}]   ;;  %s207_s2 = inlined_call_operand.hbm [shape: f32[16,128], index: 2, kind: output, shape index: {}]  }
   0x1   :  { %8 = vsyncpa [#allocation4], 0  ;;  %s15_s11 = sshll.u32 %s206_s1, 4  ;;  %s166_s12 = smov [#allocation2]   ;;  %s16_s11 = int_to_ptr.hbm [resolvable:$true] %s15_s11 }
   0x2   :  { %s17_s13 = sshll.u32 %s166_s12, 4  ;;  %s167_s14 = smov 128   ;;  %s18_s13 = int_to_ptr.vmem [resolvable:$true] %s17_s13 }
   0x3   :  { %s168_s15 = smov 8  }
   0x4   :  { %23 = dma.hbm_to_vmem [thread:$0]  %s16_s11, 512, %s18_s13, [#allocation3], %s167_s14, %s167_s14, %s168_s15  }
   0x5   :  { %162 = dma.done.wait [#allocation3], 512  }
   0x6   :  { %163 = vsyncadd [#allocation3], 4294966784  ;;  %v169_v0 = vmov 0   ;;  %v28_v1 = vld [vmem:[%s205_s0] sm:$0xff]  ;;  %v47_v2 = vld [vmem:[#allocation2 + $0x18] sm:$0xff]  ;;  %v30_v7 = vlaneseq  ;;  %vm48_vm0 = vcmask 261120  }
   0x7   :  { %113 = vset.pattern.permute.xlu0 %v169_v0  ;;  %67 = vmatpush.msra.mxu0 %v47_v2  ;;  %v46_v3 = vld [vmem:[#allocation2 + $0x10] sm:$0xff]  ;;  %v45_v4 = vld [vmem:[#allocation2 + $0x8] sm:$0xff]  ;;  %v44_v6 = vld [vmem:[#allocation2] sm:$0xff]  ;;  %v170_v10 = vmov 0.0   ;;  %s86_s22 = sshll.u32 %s207_s2, 4  ;;  %s87_s22 = int_to_ptr.hbm [resolvable:$true] %s86_s22 }
   0x8   :  { %33 = vperm.xlu0 %113, %v28_v1   ;;  %103 = vmatpush.msra.mxu1 %v47_v2  ;;  %v29_v5 = vld [vmem:[%s205_s0 + $0x8] sm:$0xff]  ;;  %v31_v8 = vand.u32 127, %v30_v7  ;;  %s171_s0 = smov [#allocation5]  }
   0x9   :  { %68 = vmatpush.msra.mxu0 %v46_v3  ;;  %s84_s19 = sshll.u32 %s171_s0, 4  ;;  %s85_s19 = int_to_ptr.vmem [resolvable:$true] %s84_s19 }
   0xa   :  { %104 = vmatpush.msra.mxu1 %v46_v3 }
   0xb   :  { %69 = vmatpush.msra.mxu0 %v45_v4 }
   0xc   :  { %105 = vmatpush.msra.mxu1 %v45_v4 }
   0xd   :  { %70 = vmatpush.msra.mxu0 %v44_v6 }
   0xe   :  { %106 = vmatpush.msra.mxu1 %v44_v6 }
  0x10   :  { %36 = vperm.xlu0 %113, %v29_v5  }
  0x7a   :  { %v34_v9 = vpop.permute.xlu0 %33 }
  0x7b   :  { %vm38_vm1 = vcmp.eq.s32.totalorder %v34_v9, %v31_v8 }
  0x7c   :  { %v99_v11 = vsel %vm38_vm1, 1.0, %v170_v10 }
  0x7d   :  { %101 = vmatmul.msk.f32.vlgmr.msra.gmra.mxu0 %vm48_vm0, %v99_v11 }
  0x82   :  { %v37_v12 = vpop.permute.xlu0 %36 }
  0x83   :  { %vm39_vm2 = vcmp.eq.s32.totalorder %v37_v12, %v31_v8 }
  0x84   :  { %v100_v13 = vsel %vm39_vm2, 1.0, %v170_v10 }
  0x85   :  { %102 = vmatmul.msk.f32.vlgmr.msra.gmra.mxu1 %vm48_vm0, %v100_v13 }
  0xfa   :  { %v72_v14 = vpop.f32.mrf.mxu0 }
  0xfb   :  { %78 = vst [vmem:[#allocation5] sm:$0xff] %v72_v14 }
 0x102   :  { %v75_v15 = vpop.f32.mrf.mxu1 }
 0x103   :  { %79 = vst [vmem:[#allocation5 + $0x8] sm:$0xff] %v75_v15 }
 0x104   :  { %92 = dma.vmem_to_hbm [thread:$0]  %s85_s19, 256, %s87_s22, [#allocation4], %s167_s14, %s167_s14, %s168_s15  }
 0x105   :  { %164 = dma.done.wait [#allocation4], 256  }
 0x106   :  { %165 = vsyncadd [#allocation4], 4294967040 }
 0x107   :  { %97 = vsyncpa [#allocation3], 1 }
 0x108   :  { %98 = vsyncpa [#allocation4], 1 }

</bundles_post_ra>
